<compile_context>
chip_gen: v7x
topology: tpu7x:2x2x1
jax: 0.10.0
libtpu: 0.0.40
codegen_flags: <defaults>
</compile_context>

<pallas_src>
import jax
import jax.numpy as jnp
from jax.experimental import pallas as pl
from jax.experimental.pallas import tpu as pltpu

# TN: contract over axis 0 of both operands -> out = w^T @ p, shape (Cout, M).
_TN_DIM_NUMBERS = (((0,), (0,)), ((), ()))


def _conv_fused_kernel(w_ref, p_ref, b_ref, s_ref, o_ref):
    """Fused conv-as-matmul + (bias - 1.0 - shift) epilogue, lane-dense output.

    w_ref: (K, Cout)  f32 reshaped conv weights, K = kH*kW*Cin on sublanes
    p_ref: (K, M)     f32 im2col patches, M = N*Ho*Wo on lanes
    b_ref: (Cout, 1)  f32 (bias - 1.0), lane-broadcast in-kernel
    s_ref: (1, M)     f32 width shift pre-tiled to M, sublane-broadcast
    o_ref: (Cout, M)  f32 output
    """
    acc = jax.lax.dot_general(
        w_ref[...], p_ref[...], _TN_DIM_NUMBERS,
        preferred_element_type=jnp.float32)              # (Cout, M) on the MXU
    # Two broadcast VPU adds -- free filler under the matmul.
    o_ref[...] = acc + b_ref[...] - s_ref[...]


@jax.jit
def model_forward(x_nchw, weight, bias, shift):
    """x_nchw: (N, Cin, H, W) f32; weight: (Cout, Cin, 3, 3); bias: (Cout,);
    shift: (Wo,) -- the torch.randn(8) term, broadcast along the width axis."""
    N, Cin, H, W = x_nchw.shape
    Cout = weight.shape[0]
    kH = kW = 3
    stride, pad = 2, 1
    Ho = (H + 2 * pad - kH) // stride + 1
    Wo = (W + 2 * pad - kW) // stride + 1
    assert shift.shape == (Wo,), "shift must broadcast against output width"

    M = N * Ho * Wo
    K = kH * kW * Cin

    # ---- glue (fused into the pallas operands via allow_input_fusion) ----
    # im2col directly in (K, M) layout; K ordered (kh, kw, cin), M ordered
    # (n, ho, wo) row-major.  A single up-front transpose, then 9 strided
    # slices that collapse straight into rows -- no per-slice transposes.
    x = jnp.transpose(x_nchw, (1, 0, 2, 3))                      # (Cin, N, H, W)
    xp = jnp.pad(x, ((0, 0), (0, 0), (pad, pad), (pad, pad)))    # (Cin, N, H+2, W+2)
    rows = [
        xp[:, :, kh:kh + stride * Ho:stride, kw:kw + stride * Wo:stride]
        .reshape(Cin, M)
        for kh in range(kH) for kw in range(kW)
    ]
    patches_t = jnp.concatenate(rows, axis=0)                    # (K, M) f32

    # torch weight (Cout, Cin, kH, kW) -> (kH, kW, Cin, Cout) -> (K, Cout)
    w2d = jnp.transpose(weight, (2, 3, 1, 0)).reshape(K, Cout)

    bias_col = (bias.astype(jnp.float32) - jnp.float32(1.0)).reshape(Cout, 1)
    shift_row = jnp.tile(shift.astype(jnp.float32), N * Ho).reshape(1, M)

    out_t = pl.pallas_call(
        _conv_fused_kernel,
        out_shape=jax.ShapeDtypeStruct((Cout, M), jnp.float32),
        in_specs=[
            pl.BlockSpec((K, Cout), lambda: (0, 0)),
            pl.BlockSpec((K, M), lambda: (0, 0)),
            pl.BlockSpec((Cout, 1), lambda: (0, 0)),
            pl.BlockSpec((1, M), lambda: (0, 0)),
        ],
        out_specs=pl.BlockSpec((Cout, M), lambda: (0, 0)),
        compiler_params=pltpu.CompilerParams(
            # Tight, honest VMEM budget (padded working set ~0.4 MiB).
            vmem_limit_bytes=4 << 20,
            # Fuse the im2col / weight-reshape / bias / shift producers into
            # the custom-call operands instead of an HBM round trip.
            allow_input_fusion=[True, True, True, True],
        ),
    )(w2d, patches_t, bias_col, shift_row)

    # (Cout, M) -> (Cout, N, Ho, Wo) -> NCHW (kept only for PyTorch semantics).
    return jnp.transpose(out_t.reshape(Cout, N, Ho, Wo), (1, 0, 2, 3))


def _reference(x_nchw, weight, bias, shift):
    """Pure-JAX reference (conv + scalar + broadcast subtract), for validation."""
    v1 = jax.lax.conv_general_dilated(
        x_nchw, weight, window_strides=(2, 2), padding=((1, 1), (1, 1)),
        dimension_numbers=("NCHW", "OIHW", "NCHW"),
        precision=jax.lax.Precision.HIGHEST)
    v1 = v1 + bias.reshape(1, -1, 1, 1)
    return v1 - 1.0 - shift.reshape(1, 1, 1, -1)


if __name__ == "__main__":
    key = jax.random.PRNGKey(0)
    kx, kw, kb, ks = jax.random.split(key, 4)

    N, Cin, H, W = 2, 32, 16, 16     # conv output: (2, 32, 8, 8) -> Wo = 8
    Cout = 32

    x2 = jax.random.normal(kx, (N, Cin, H, W), dtype=jnp.float32)
    # Deterministic Conv2d params (Kaiming-uniform-like bound, fixed seed).
    fan_in = Cin * 3 * 3
    bound = 1.0 / (fan_in ** 0.5)
    weight = jax.random.uniform(kw, (Cout, Cin, 3, 3), jnp.float32, -bound, bound)
    bias = jax.random.uniform(kb, (Cout,), jnp.float32, -bound, bound)
    # The "torch.randn(8)" term, broadcast along the trailing (width) axis.
    shift = jax.random.normal(ks, (8,), dtype=jnp.float32)

    out = model_forward(x2, weight, bias, shift)
    jax.block_until_ready(out)

    ref = _reference(x2, weight, bias, shift)
    assert out.shape == (N, Cout, 8, 8), out.shape
    # f32 operands + f32 MXU accumulation -> tight tolerance (was 2e-2 w/ bf16).
    err = float(jnp.max(jnp.abs(out - ref)))
    assert jnp.allclose(out, ref, atol=1e-3, rtol=1e-3), err

    print("KERNEL_OK")
</pallas_src>

<mosaic_0001>
module attributes {stable_mosaic.version = 11 : i64} {
  func.func @_conv_fused_kernel(%arg0: memref<288x32xf32, #tpu.memory_space<vmem>>, %arg1: memref<288x128xf32, #tpu.memory_space<vmem>>, %arg2: memref<32x1xf32, #tpu.memory_space<vmem>>, %arg3: memref<1x128xf32, #tpu.memory_space<vmem>>, %arg4: memref<32x128xf32, #tpu.memory_space<vmem>>) attributes {dimension_semantics = [], scalar_prefetch = 0 : i64, scratch_operands = 0 : i64, tpu.core_type = #tpu.core_type<tc>} {
    %c0 = arith.constant 0 : index
    %c0_0 = arith.constant 0 : index
    %0 = vector.load %arg0[%c0, %c0_0] : memref<288x32xf32, #tpu.memory_space<vmem>>, vector<288x32xf32>
    %c0_1 = arith.constant 0 : index
    %c0_2 = arith.constant 0 : index
    %1 = vector.load %arg1[%c0_1, %c0_2] : memref<288x128xf32, #tpu.memory_space<vmem>>, vector<288x128xf32>
    %cst = arith.constant dense<0.000000e+00> : vector<32x128xf32>
    %2 = tpu.matmul %0, %1, %cst {dimension_numbers = #tpu.dot_dimension_numbers<[0], [0], [1], [1], [0, 1, 1, 1], [], []>} : vector<288x32xf32>, vector<288x128xf32>, vector<32x128xf32> -> vector<32x128xf32>
    %c0_3 = arith.constant 0 : index
    %c0_4 = arith.constant 0 : index
    %3 = vector.load %arg2[%c0_3, %c0_4] : memref<32x1xf32, #tpu.memory_space<vmem>>, vector<32x1xf32>
    %4 = vector.broadcast %3 : vector<32x1xf32> to vector<32x128xf32>
    %5 = arith.addf %2, %4 : vector<32x128xf32>
    %c0_5 = arith.constant 0 : index
    %c0_6 = arith.constant 0 : index
    %6 = vector.load %arg3[%c0_5, %c0_6] : memref<1x128xf32, #tpu.memory_space<vmem>>, vector<1x128xf32>
    %7 = vector.broadcast %6 : vector<1x128xf32> to vector<32x128xf32>
    %8 = arith.subf %5, %7 : vector<32x128xf32>
    %c0_7 = arith.constant 0 : index
    %c0_8 = arith.constant 0 : index
    %9 = vector.load %arg4[%c0_7, %c0_8] : memref<32x128xf32, #tpu.memory_space<vmem>>, vector<32x128xf32>
    tpu.vector_store %arg4[%c0_7, %c0_8], %8 {strides = array<i32>} : memref<32x128xf32, #tpu.memory_space<vmem>>, vector<32x128xf32>,
    return
  }
}

</mosaic_0001>

<bundles_post_ra>
// kernel: tile.8
= control target key start
LH: loop header
LB: loop body
LE: loop exit
PB: predicated region body
PF: predicated region fallthrough
CT: control target
= control target key end

     0   :  { %s28_s0 = inlined_call_operand.vmem [shape: f32[8], index: 0, kind: input, shape index: {}]   ;;  %s29_s1 = inlined_call_operand.vmem [shape: f32[16,8], index: 1, kind: output, shape index: {}]  }
   0x1   :  { %v4_v0 = vld [vmem:[%s28_s0] ss:$0 sm:$0xff] }
   0x2   :  { %5 = vst [vmem:[%s29_s1] sm:$0xff] %v4_v0  ;;  %8 = vst [vmem:[%s29_s1 + $0x8] sm:$0xff] %v4_v0 }

// kernel: tile.9
= control target key start
LH: loop header
LB: loop body
LE: loop exit
PB: predicated region body
PF: predicated region fallthrough
CT: control target
= control target key end

     0   :  { %s131_s10 = smov 120   ;;  %s132_s11 = smov 104   ;;  %vm3_vm0 = vcmask 64512   ;;  %vm9_vm1 = vcmask 1048512   ;;  %vm15_vm2 = vcmask 982912   ;;  %vm21_vm3 = vcmask 917312   ;;  %s207_s0 = inlined_call_operand.vmem [shape: f32[16,8], index: 0, kind: input, shape index: {}]   ;;  %s208_s1 = inlined_call_operand.vmem [shape: f32[1,128], index: 1, kind: output, shape index: {}]  }
   0x1   :  { %v101_v0 = vld [vmem:[%s207_s0 + $0xf] sm:$0x1]   ;;  %v103_v1 = vld [vmem:[%s207_s0 + $0xd] sm:$0x1]   ;;  %v102_v2 = vld [vmem:[%s207_s0 + $0xe] sm:$0x1]  }
   0x2   :  { %7 = vrot.lane.b32.xlu0 %v101_v0, %s131_s10  ;;  %19 = vrot.lane.b32.xlu1 %v103_v1, %s132_s11  ;;  %v104_v3 = vld [vmem:[%s207_s0 + $0xc] sm:$0x1]   ;;  %s133_s16 = smov 112   ;;  %s134_s17 = smov 96   ;;  %v105_v4 = vld [vmem:[%s207_s0 + $0xb] sm:$0x1]  }
   0x3   :  { %v106_v5 = vld [vmem:[%s207_s0 + $0xa] sm:$0x1]   ;;  %v2_v6 = vld [vmem:[%s207_s0] sm:$0x1]   ;;  %s135_s24 = smov 88   ;;  %s136_s25 = smov 80  }
   0x4   :  { %4 = vst.msk [vmem:[#allocation0] sm:$0x1] %vm3_vm0, %v2_v6   ;;  %v107_v7 = vld [vmem:[%s207_s0 + $0x9] sm:$0x1]   ;;  %v108_v8 = vld [vmem:[%s207_s0 + $0x8] sm:$0x1]  }
   0x5   :  { %s137_s30 = smov 72   ;;  %s138_s2 = smov 64   ;;  %v109_v9 = vld [vmem:[%s207_s0 + $0x7] sm:$0x1]   ;;  %v110_v10 = vld [vmem:[%s207_s0 + $0x6] sm:$0x1]  }
   0x6   :  { %13 = vrot.lane.b32.xlu0 %v102_v2, %s133_s16  ;;  %25 = vrot.lane.b32.xlu1 %v104_v3, %s134_s17  ;;  %s139_s7 = smov 56   ;;  %s140_s8 = smov 48   ;;  %v111_v11 = vld [vmem:[%s207_s0 + $0x5] sm:$0x1]   ;;  %v112_v12 = vld [vmem:[%s207_s0 + $0x4] sm:$0x1]  }
   0x7   :  { %s141_s13 = smov 40   ;;  %s142_s14 = smov 32   ;;  %v113_v13 = vld [vmem:[%s207_s0 + $0x3] sm:$0x1]   ;;  %v114_v14 = vld [vmem:[%s207_s0 + $0x2] sm:$0x1]  }
   0x8   :  { %s143_s19 = smov 24   ;;  %s144_s20 = smov 16   ;;  %v115_v15 = vld [vmem:[%s207_s0 + $0x1] sm:$0x1]   ;;  %vm27_vm4 = vcmask 851712   ;;  %vm33_vm5 = vcmask 786112  }
   0x9   :  { %s145_s0 = smov 8   ;;  %vm39_vm6 = vcmask 720512   ;;  %vm45_vm7 = vcmask 654912   ;;  %vm51_vm8 = vcmask 589312   ;;  %vm57_vm9 = vcmask 523712  }
   0xa   :  { %31 = vrot.lane.b32.xlu0 %v105_v4, %s135_s24  ;;  %37 = vrot.lane.b32.xlu1 %v106_v5, %s136_s25  ;;  %vm63_vm10 = vcmask 458112   ;;  %vm69_vm11 = vcmask 392512   ;;  %vm75_vm12 = vcmask 326912   ;;  %vm81_vm13 = vcmask 261312  }
   0xb   :  { %vm87_vm14 = vcmask 195712   ;;  %vm93_vm15 = vcmask 130112  }
   0xe   :  { %43 = vrot.lane.b32.xlu0 %v107_v7, %s137_s30  ;;  %49 = vrot.lane.b32.xlu1 %v108_v8, %s138_s2 }
  0x12   :  { %55 = vrot.lane.b32.xlu0 %v109_v9, %s139_s7  ;;  %61 = vrot.lane.b32.xlu1 %v110_v10, %s140_s8 }
  0x16   :  { %67 = vrot.lane.b32.xlu0 %v111_v11, %s141_s13  ;;  %73 = vrot.lane.b32.xlu1 %v112_v12, %s142_s14 }
  0x1a   :  { %79 = vrot.lane.b32.xlu0 %v113_v13, %s143_s19  ;;  %85 = vrot.lane.b32.xlu1 %v114_v14, %s144_s20 }
  0x1e   :  { %91 = vrot.lane.b32.xlu0 %v115_v15, %s145_s0 }
  0x74   :  { %v8_v16 = vpop.permute.xlu0 %7   ;;  %v20_v17 = vpop.permute.xlu1 %19  }
  0x75   :  { %10 = vst.msk [vmem:[#allocation0] sm:$0x1] %vm9_vm1, %v8_v16  }
  0x78   :  { %v14_v18 = vpop.permute.xlu0 %13   ;;  %v26_v19 = vpop.permute.xlu1 %25  }
  0x79   :  { %16 = vst.msk [vmem:[#allocation0] sm:$0x1] %vm15_vm2, %v14_v18  }
  0x7a   :  { %22 = vst.msk [vmem:[#allocation0] sm:$0x1] %vm21_vm3, %v20_v17  }
  0x7b   :  { %28 = vst.msk [vmem:[#allocation0] sm:$0x1] %vm27_vm4, %v26_v19  }
  0x7c   :  { %v32_v20 = vpop.permute.xlu0 %31   ;;  %v38_v21 = vpop.permute.xlu1 %37  }
  0x7d   :  { %34 = vst.msk [vmem:[#allocation0] sm:$0x1] %vm33_vm5, %v32_v20  }
  0x7e   :  { %40 = vst.msk [vmem:[#allocation0] sm:$0x1] %vm39_vm6, %v38_v21  }
  0x80   :  { %v44_v22 = vpop.permute.xlu0 %43   ;;  %v50_v23 = vpop.permute.xlu1 %49  }
  0x81   :  { %46 = vst.msk [vmem:[#allocation0] sm:$0x1] %vm45_vm7, %v44_v22  }
  0x82   :  { %52 = vst.msk [vmem:[#allocation0] sm:$0x1] %vm51_vm8, %v50_v23  }
  0x84   :  { %v56_v24 = vpop.permute.xlu0 %55   ;;  %v62_v25 = vpop.permute.xlu1 %61  }
  0x85   :  { %58 = vst.msk [vmem:[#allocation0] sm:$0x1] %vm57_vm9, %v56_v24  }
  0x86   :  { %64 = vst.msk [vmem:[#allocation0] sm:$0x1] %vm63_vm10, %v62_v25  }
  0x88   :  { %v68_v26 = vpop.permute.xlu0 %67   ;;  %v74_v27 = vpop.permute.xlu1 %73  }
  0x89   :  { %70 = vst.msk [vmem:[#allocation0] sm:$0x1] %vm69_vm11, %v68_v26  }
  0x8a   :  { %76 = vst.msk [vmem:[#allocation0] sm:$0x1] %vm75_vm12, %v74_v27  }
  0x8c   :  { %v80_v28 = vpop.permute.xlu0 %79   ;;  %v86_v29 = vpop.permute.xlu1 %85  }
  0x8d   :  { %82 = vst.msk [vmem:[#allocation0] sm:$0x1] %vm81_vm13, %v80_v28  }
  0x8e   :  { %88 = vst.msk [vmem:[#allocation0] sm:$0x1] %vm87_vm14, %v86_v29  }
  0x90   :  { %v92_v30 = vpop.permute.xlu0 %91  }
  0x91   :  { %94 = vst.msk [vmem:[#allocation0] sm:$0x1] %vm93_vm15, %v92_v30  }
  0x98   :  { %v98_v31 = vld [vmem:[#allocation0] sm:$0x1] }
  0x99   :  { %100 = vst [vmem:[%s208_s1] sm:$0x1] %v98_v31 }

// kernel: model_forward.1
= control target key start
LH: loop header
LB: loop body
LE: loop exit
PB: predicated region body
PF: predicated region fallthrough
CT: control target
= control target key end

     0   :  { %vm209_vm0 = vcmask 261120   ;;  %s851_s0 = inlined_call_operand.vmem [shape: f32[288,32], index: 0, kind: input, shape index: {}]   ;;  %s852_s1 = inlined_call_operand.vmem [shape: f32[288,128], index: 1, kind: input, shape index: {}]   ;;  %s853_s2 = inlined_call_operand.vmem [shape: f32[32,1], index: 2, kind: input, shape index: {}]   ;;  %s854_s3 = inlined_call_operand.vmem [shape: f32[1,128], index: 3, kind: input, shape index: {}]   ;;  %s855_s4 = inlined_call_operand.vmem [shape: f32[32,128], index: 4, kind: output, shape index: {}]  }
   0x1   :  { %v17_v0 = vld [vmem:[%s851_s0] sm:$0xff]  ;;  %v18_v4 = vld [vmem:[%s851_s0 + $0x8] sm:$0xff]  ;;  %v19_v8 = vld [vmem:[%s851_s0 + $0x10] sm:$0xff] }
   0x2   :  { %v33_v1 = vld [vmem:[%s851_s0 + $0x80] sm:$0xff]  ;;  %v34_v5 = vld [vmem:[%s851_s0 + $0x88] sm:$0xff]  ;;  %v35_v9 = vld [vmem:[%s851_s0 + $0x90] sm:$0xff] }
   0x3   :  { %v49_v2 = vld [vmem:[%s851_s0 + $0x100] sm:$0xff]  ;;  %v524_v3 = vpack.i.bf16 %v17_v0, %v33_v1  ;;  %v50_v6 = vld [vmem:[%s851_s0 + $0x108] sm:$0xff]  ;;  %v526_v7 = vpack.i.bf16 %v18_v4, %v34_v5  ;;  %v51_v10 = vld [vmem:[%s851_s0 + $0x110] sm:$0xff]  ;;  %v528_v11 = vpack.i.bf16 %v19_v8, %v35_v9 }
   0x4   :  { %177 = vxpose.xlu1.b32.start [1/4] (short) (narrow) %v49_v2, 32  ;;  %v20_v12 = vld [vmem:[%s851_s0 + $0x18] sm:$0xff]  ;;  %v21_v16 = vld [vmem:[%s851_s0 + $0x20] sm:$0xff]  ;;  %v70_v19 = vld [vmem:[%s852_s1 + $0x88] sm:$0xff] }
   0x5   :  { %525 = vxpose.xlu0.b32.start [1/16] (narrow) %v524_v3, 32  ;;  %v36_v13 = vld [vmem:[%s851_s0 + $0x98] sm:$0xff]  ;;  %v37_v17 = vld [vmem:[%s851_s0 + $0xa0] sm:$0xff]  ;;  %v54_v22 = vld [vmem:[%s852_s1 + $0x8] sm:$0xff] }
   0x6   :  { %v52_v14 = vld [vmem:[%s851_s0 + $0x118] sm:$0xff]  ;;  %v530_v15 = vpack.i.bf16 %v20_v12, %v36_v13  ;;  %v69_v18 = vld [vmem:[%s852_s1 + $0x80] sm:$0xff]  ;;  %v71_v23 = vld [vmem:[%s852_s1 + $0x90] sm:$0xff]  ;;  %v532_v30 = vpack.i.bf16 %v21_v16, %v37_v17 }
   0x7   :  { %v53_v20 = vld [vmem:[%s852_s1] sm:$0xff]  ;;  %v482_v21 = vpack.c.bf16 %v70_v19, %v69_v18  ;;  %v72_v24 = vld [vmem:[%s852_s1 + $0x98] sm:$0xff]  ;;  %v55_v27 = vld [vmem:[%s852_s1 + $0x10] sm:$0xff] }
   0x8   :  { %178 = vxpose.xlu1.b32.cont [2/4] (short) (narrow) %v50_v6, 32  ;;  %v484_v25 = vpack.c.bf16 %v54_v22, %v53_v20  ;;  %v486_v26 = vpack.c.bf16 %v72_v24, %v71_v23  ;;  %v56_v28 = vld [vmem:[%s852_s1 + $0x18] sm:$0xff]  ;;  %v73_v29 = vld [vmem:[%s852_s1 + $0xa0] sm:$0xff]  ;;  %v74_v31 = vld [vmem:[%s852_s1 + $0xa8] sm:$0xff] }
   0x9   :  { %527 = vxpose.xlu0.b32.cont [2/16] (narrow) %v526_v7, 32  ;;  %483 = vmatprep.subr.bf16.mxu0 %v482_v21  ;;  %v22_v32 = vld [vmem:[%s851_s0 + $0x28] sm:$0xff]  ;;  %v488_v34 = vpack.c.bf16 %v56_v28, %v55_v27  ;;  %v490_v35 = vpack.c.bf16 %v74_v31, %v73_v29  ;;  %v57_v36 = vld [vmem:[%s852_s1 + $0x20] sm:$0xff]  ;;  %v75_v38 = vld [vmem:[%s852_s1 + $0xb0] sm:$0xff]  ;;  %v578_v31 = vmov 0  }
   0xa   :  { %v38_v33 = vld [vmem:[%s851_s0 + $0xa8] sm:$0xff]  ;;  %485 = vmatpush3.bf16.msra.mxu0 %v484_v25  ;;  %v76_v39 = vld [vmem:[%s852_s1 + $0xb8] sm:$0xff]  ;;  %v23_v41 = vld [vmem:[%s851_s0 + $0x30] sm:$0xff] }
   0xb   :  { %487 = vmatprep.subr.bf16.mxu0 %v486_v26  ;;  %v58_v37 = vld [vmem:[%s852_s1 + $0x28] sm:$0xff]  ;;  %v534_v40 = vpack.i.bf16 %v22_v32, %v38_v33  ;;  %v39_v42 = vld [vmem:[%s851_s0 + $0xb0] sm:$0xff]  ;;  %v494_v44 = vpack.c.bf16 %v76_v39, %v75_v38  ;;  %v60_v46 = vld [vmem:[%s852_s1 + $0x38] sm:$0xff] }
   0xc   :  { %179 = vxpose.xlu1.b32.cont [3/4] (short) (narrow) %v51_v10, 32  ;;  %v492_v43 = vpack.c.bf16 %v58_v37, %v57_v36  ;;  %v59_v45 = vld [vmem:[%s852_s1 + $0x30] sm:$0xff]  ;;  %v77_v47 = vld [vmem:[%s852_s1 + $0xc0] sm:$0xff]  ;;  %v78_v48 = vld [vmem:[%s852_s1 + $0xc8] sm:$0xff]  ;;  %v536_v51 = vpack.i.bf16 %v23_v41, %v39_v42 }
   0xd   :  { %529 = vxpose.xlu0.b32.cont [3/16] (narrow) %v528_v11, 32  ;;  %v85_v49 = vld [vmem:[%s852_s1 + $0x100] sm:$0xff]  ;;  %v86_v50 = vld [vmem:[%s852_s1 + $0x108] sm:$0xff]  ;;  %v87_v53 = vld [vmem:[%s852_s1 + $0x110] sm:$0xff]  ;;  %v496_v57 = vpack.c.bf16 %v60_v46, %v59_v45  ;;  %v498_v59 = vpack.c.bf16 %v78_v48, %v77_v47 }
   0xe   :  { %489 = vmatpush3.bf16.msra.mxu0 %v488_v34  ;;  %v514_v52 = vpack.c.bf16 %v86_v50, %v85_v49  ;;  %v88_v54 = vld [vmem:[%s852_s1 + $0x118] sm:$0xff]  ;;  %v61_v60 = vld [vmem:[%s852_s1 + $0x40] sm:$0xff]  ;;  %v62_v61 = vld [vmem:[%s852_s1 + $0x48] sm:$0xff] }
   0xf   :  { %491 = vmatprep.subr.bf16.mxu0 %v490_v35  ;;  %v24_v55 = vld [vmem:[%s851_s0 + $0x38] sm:$0xff]  ;;  %v518_v58 = vpack.c.bf16 %v88_v54, %v87_v53  ;;  %v79_v62 = vld [vmem:[%s852_s1 + $0xd0] sm:$0xff]  ;;  %v25_v1 = vld [vmem:[%s851_s0 + $0x40] sm:$0xff]  ;;  %v500_v3 = vpack.c.bf16 %v62_v61, %v61_v60 }
  0x10   :  { %180 = vxpose.xlu1.b32.end [4/4] (short) (narrow) %v52_v14, 32  ;;  %v40_v56 = vld [vmem:[%s851_s0 + $0xb8] sm:$0xff]  ;;  %515 = vmatprep.subr.bf16.mxu1 %v514_v52  ;;  %v41_v2 = vld [vmem:[%s851_s0 + $0xc0] sm:$0xff]  ;;  %v63_v5 = vld [vmem:[%s852_s1 + $0x50] sm:$0xff] }
  0x11   :  { %531 = vxpose.xlu0.b32.cont [4/16] (narrow) %v530_v15, 32  ;;  %v80_v63 = vld [vmem:[%s852_s1 + $0xd8] sm:$0xff]  ;;  %517 = vmatpush3.bf16.msra.mxu1 %v514_v52  ;;  %v538_v0 = vpack.i.bf16 %v24_v55, %v40_v56  ;;  %v81_v7 = vld [vmem:[%s852_s1 + $0xe0] sm:$0xff]  ;;  %v82_v8 = vld [vmem:[%s852_s1 + $0xe8] sm:$0xff]  ;;  %v540_v9 = vpack.i.bf16 %v25_v1, %v41_v2 }
  0x12   :  { %493 = vmatpush3.bf16.msra.mxu0 %v492_v43  ;;  %519 = vmatprep.subr.bf16.mxu1 %v518_v58  ;;  %v502_v4 = vpack.c.bf16 %v80_v63, %v79_v62  ;;  %v64_v6 = vld [vmem:[%s852_s1 + $0x58] sm:$0xff]  ;;  %v26_v10 = vld [vmem:[%s851_s0 + $0x48] sm:$0xff]  ;;  %v506_v13 = vpack.c.bf16 %v82_v8, %v81_v7  ;;  %v65_v14 = vld [vmem:[%s852_s1 + $0x60] sm:$0xff] }
  0x13   :  { %495 = vmatprep.subr.bf16.mxu0 %v494_v44  ;;  %v42_v11 = vld [vmem:[%s851_s0 + $0xc8] sm:$0xff]  ;;  %v504_v12 = vpack.c.bf16 %v64_v6, %v63_v5  ;;  %v83_v16 = vld [vmem:[%s852_s1 + $0xf0] sm:$0xff]  ;;  %v84_v17 = vld [vmem:[%s852_s1 + $0xf8] sm:$0xff] }
  0x14   :  { %v66_v15 = vld [vmem:[%s852_s1 + $0x68] sm:$0xff]  ;;  %v542_v18 = vpack.i.bf16 %v26_v10, %v42_v11  ;;  %v27_v19 = vld [vmem:[%s851_s0 + $0x50] sm:$0xff]  ;;  %v510_v22 = vpack.c.bf16 %v84_v17, %v83_v16  ;;  %v68_v24 = vld [vmem:[%s852_s1 + $0x78] sm:$0xff] }
  0x15   :  { %533 = vxpose.xlu0.b32.cont [5/16] (narrow) %v532_v30, 32  ;;  %521 = vmatpush3.bf16.msra.mxu1 %v518_v58  ;;  %v43_v20 = vld [vmem:[%s851_s0 + $0xd0] sm:$0xff]  ;;  %v508_v21 = vpack.c.bf16 %v66_v15, %v65_v14  ;;  %v28_v26 = vld [vmem:[%s851_s0 + $0x58] sm:$0xff]  ;;  %v89_v29 = vld [vmem:[%s853_s2] sm:$0xff] }
  0x16   :  { %497 = vmatpush3.bf16.msra.mxu0 %v496_v57  ;;  %v67_v23 = vld [vmem:[%s852_s1 + $0x70] sm:$0xff]  ;;  %v544_v25 = vpack.i.bf16 %v27_v19, %v43_v20  ;;  %v44_v27 = vld [vmem:[%s851_s0 + $0xd8] sm:$0xff]  ;;  %v29_v32 = vld [vmem:[%s851_s0 + $0x60] sm:$0xff] }
  0x17   :  { %499 = vmatprep.subr.bf16.mxu0 %v498_v59  ;;  %v512_v28 = vpack.c.bf16 %v68_v24, %v67_v23  ;;  %v546_v30 = vpack.i.bf16 %v28_v26, %v44_v27  ;;  %v45_v33 = vld [vmem:[%s851_s0 + $0xe0] sm:$0xff]  ;;  %v90_v34 = vld [vmem:[%s853_s2 + $0x8] sm:$0xff]  ;;  %v91_v38 = vld [vmem:[%s853_s2 + $0x10] sm:$0xff] }
  0x18   :  { %v548_v35 = vpack.i.bf16 %v29_v32, %v45_v33  ;;  %v30_v36 = vld [vmem:[%s851_s0 + $0x68] sm:$0xff]  ;;  %v47_v41 = vld [vmem:[%s851_s0 + $0xf0] sm:$0xff]  ;;  %v92_v42 = vld [vmem:[%s853_s2 + $0x18] sm:$0xff] }
  0x19   :  { %535 = vxpose.xlu0.b32.cont [6/16] (narrow) %v534_v40, 32  ;;  %v46_v37 = vld [vmem:[%s851_s0 + $0xe8] sm:$0xff]  ;;  %v31_v40 = vld [vmem:[%s851_s0 + $0x70] sm:$0xff]  ;;  %v32_v44 = vld [vmem:[%s851_s0 + $0x78] sm:$0xff] }
  0x1a   :  { %501 = vmatpush3.bf16.msra.mxu0 %v500_v3  ;;  %v550_v39 = vpack.i.bf16 %v30_v36, %v46_v37  ;;  %v552_v43 = vpack.i.bf16 %v31_v40, %v47_v41  ;;  %v48_v45 = vld [vmem:[%s851_s0 + $0xf8] sm:$0xff] }
  0x1b   :  { %503 = vmatprep.subr.bf16.mxu0 %v502_v4  ;;  %v554_v46 = vpack.i.bf16 %v32_v44, %v48_v45 }
  0x1d   :  { %537 = vxpose.xlu0.b32.cont [7/16] (narrow) %v536_v51, 32 }
  0x1e   :  { %505 = vmatpush3.bf16.msra.mxu0 %v504_v12 }
  0x1f   :  { %507 = vmatprep.subr.bf16.mxu0 %v506_v13 }
  0x21   :  { %539 = vxpose.xlu0.b32.cont [8/16] (narrow) %v538_v0, 32 }
  0x22   :  { %509 = vmatpush3.bf16.msra.mxu0 %v508_v21 }
  0x23   :  { %511 = vmatprep.subr.bf16.mxu0 %v510_v22 }
  0x25   :  { %541 = vxpose.xlu0.b32.cont [9/16] (narrow) %v540_v9, 32  ;;  %v415_v9 = vld [vmem:[%s854_s3] ss:$0 sm:$0xff] }
  0x26   :  { %513 = vmatpush3.bf16.msra.mxu0 %v512_v28 }
  0x29   :  { %543 = vxpose.xlu0.b32.cont [10/16] (narrow) %v542_v18, 32 }
  0x2d   :  { %545 = vxpose.xlu0.b32.cont [11/16] (narrow) %v544_v25, 32 }
  0x2e   :  { %576 = vset.pattern.permute.xlu1 %v578_v31 }
  0x2f   :  { %95 = vperm.xlu1 %576, %v89_v29  }
  0x31   :  { %547 = vxpose.xlu0.b32.cont [12/16] (narrow) %v546_v30, 32 }
  0x33   :  { %100 = vperm.xlu1 %576, %v90_v34  }
  0x35   :  { %549 = vxpose.xlu0.b32.cont [13/16] (narrow) %v548_v35, 32 }
  0x37   :  { %105 = vperm.xlu1 %576, %v91_v38  }
  0x39   :  { %551 = vxpose.xlu0.b32.cont [14/16] (narrow) %v550_v39, 32 }
  0x3b   :  { %110 = vperm.xlu1 %576, %v92_v42  }
  0x3d   :  { %553 = vxpose.xlu0.b32.cont [15/16] (narrow) %v552_v43, 32 }
  0x41   :  { %555 = vxpose.xlu0.b32.end [16/16] (narrow) %v554_v46, 32 }
  0x6a   :  { %577 = vset.pattern.permute.xlu0 %v578_v31 }
  0x84   :  { %v193_v47 = vpop.trf.xlu1 }
  0x85   :  { %476 = vmatprep.mubr.msk.f32.mxu1 %vm209_vm0, %v193_v47  ;;  %v556_v48 = vpop.trf.xlu0 }
  0x86   :  { %v557_v49 = vunpack.i.l.bf16 %v556_v48  ;;  %v560_v50 = vunpack.i.h.bf16 %v556_v48 }
  0x88   :  { %v194_v51 = vpop.trf.xlu1  ;;  %286 = vmatprep.mubr.f32.mxu0 %v557_v49 }
  0x89   :  { %477 = vmatmul.mubr.msk.f32.vlgmr.msra.gmra.mrb[0].mxu1 %vm209_vm0, %v194_v51  ;;  %v561_v52 = vpop.trf.xlu0  ;;  %287 = vmatmul.mubr.f32.vlgmr.msra.gmra.mrb[0].mxu0 %v560_v50 }
  0x8a   :  { %v562_v53 = vunpack.i.l.bf16 %v561_v52  ;;  %v565_v54 = vunpack.i.h.bf16 %v561_v52 }
  0x8c   :  { %v195_v55 = vpop.trf.xlu1  ;;  %291 = vmatprep.mubr.f32.mxu0 %v562_v53 }
  0x8d   :  { %479 = vmatprep.mubr.msk.f32.mxu1 %vm209_vm0, %v195_v55  ;;  %v566_v56 = vpop.trf.xlu0  ;;  %292 = vmatmul.mubr.f32.gmra.mrb[2].mxu0 %v565_v54 }
  0x8e   :  { %v567_v57 = vunpack.i.l.bf16 %v566_v56  ;;  %v570_v58 = vunpack.i.h.bf16 %v566_v56 }
  0x90   :  { %v196_v59 = vpop.trf.xlu1  ;;  %296 = vmatprep.mubr.f32.mxu0 %v567_v57 }
  0x91   :  { %480 = vmatmul.mubr.msk.f32.gmra.mrb[2].mxu1 %vm209_vm0, %v196_v59  ;;  %v571_v60 = vpop.trf.xlu0  ;;  %297 = vmatmul.mubr.f32.gmra.mrb[4].mxu0 %v570_v58 }
  0x92   :  { %v575_v61 = vunpack.i.h.bf16 %v571_v60  ;;  %v572_v62 = vunpack.i.l.bf16 %v571_v60 }
  0x94   :  { %301 = vmatprep.mubr.f32.mxu0 %v572_v62 }
  0x95   :  { %302 = vmatmul.mubr.f32.gmra.mrb[6].mxu0 %v575_v61 }
  0xae   :  { %v96_v63 = vpop.permute.xlu1 %95 }
  0xb2   :  { %v101_v5 = vpop.permute.xlu1 %100 }
  0xb6   :  { %v106_v17 = vpop.permute.xlu1 %105 }
  0xba   :  { %v111_v27 = vpop.permute.xlu1 %110 }
 0x15c   :  { %v478_v0 = vpop.f32.mrb[0].mxu1  ;;  %v448_v1 = vpop.f32.mrb[0].mxu0 }
 0x15d   :  { %v373_v2 = vpop.f32.mrb[1].mxu1  ;;  %v449_v3 = vpop.f32.mrb[1].mxu0 }
 0x15e   :  { %v450_v4 = vadd.f32 %v449_v3, %v448_v1 }
 0x160   :  { %v451_v6 = vpop.f32.mrb[2].mxu0  ;;  %v289_v7 = vadd.f32 %v450_v4, %v96_v63 }
 0x161   :  { %v452_v8 = vpop.f32.mrb[3].mxu0 }
 0x162   :  { %v453_v10 = vadd.f32 %v452_v8, %v451_v6  ;;  %v374_v11 = vadd.f32 %v373_v2, %v289_v7 }
 0x164   :  { %v481_v12 = vpop.f32.mrb[2].mxu1  ;;  %v294_v13 = vadd.f32 %v453_v10, %v101_v5  ;;  %v399_v14 = vsub.f32 %v374_v11, %v415_v9  ;;  %v454_v15 = vpop.f32.mrb[4].mxu0 }
 0x165   :  { %v383_v16 = vpop.f32.mrb[3].mxu1  ;;  %v455_v18 = vpop.f32.mrb[5].mxu0 }
 0x166   :  { %v379_v19 = vadd.f32 %v478_v0, %v294_v13  ;;  %403 = vst [vmem:[%s855_s4] sm:$0xff] %v399_v14  ;;  %v456_v20 = vadd.f32 %v455_v18, %v454_v15 }
 0x168   :  { %v400_v21 = vsub.f32 %v379_v19, %v415_v9  ;;  %v457_v22 = vpop.f32.mrb[6].mxu0  ;;  %v299_v23 = vadd.f32 %v456_v20, %v106_v17 }
 0x169   :  { %v458_v24 = vpop.f32.mrb[7].mxu0 }
 0x16a   :  { %404 = vst [vmem:[%s855_s4 + $0x8] sm:$0xff] %v400_v21  ;;  %v459_v25 = vadd.f32 %v458_v24, %v457_v22  ;;  %v384_v26 = vadd.f32 %v383_v16, %v299_v23 }
 0x16c   :  { %v304_v28 = vadd.f32 %v459_v25, %v111_v27  ;;  %v401_v29 = vsub.f32 %v384_v26, %v415_v9 }
 0x16e   :  { %v389_v30 = vadd.f32 %v481_v12, %v304_v28  ;;  %405 = vst [vmem:[%s855_s4 + $0x10] sm:$0xff] %v401_v29 }
 0x170   :  { %v402_v31 = vsub.f32 %v389_v30, %v415_v9 }
 0x172   :  { %406 = vst [vmem:[%s855_s4 + $0x18] sm:$0xff] %v402_v31 }

</bundles_post_ra>
